<compile_context>
chip_gen: v6e
topology: v6e:2x2x1
jax: 0.10.0
libtpu: 0.0.40
codegen_flags: <defaults>
</compile_context>

<pallas_src>
import jax
import jax.numpy as jnp
from jax import lax
from jax.experimental import pallas as pl
from jax.experimental.pallas import tpu as pltpu

HIDDEN_DIM = 10
ADV_HIDDEN_DIM = 20
H1 = ADV_HIDDEN_DIM // 2  # 10
OUT_DIM = 1
_LANE = 128


def _disc_kernel(x_ref, w1t_ref, b1_ref, w2_ref, b2_ref, ot_ref):
    # x_ref  : (TB, HIDDEN_DIM)  natural-layout batch tile (streamed)
    # w1t_ref: (H1, HIDDEN_DIM)  layer-1 weight, (out, in) layout (resident)
    # b1_ref : (H1, 1)           layer-1 bias column (resident)
    # w2_ref : (H1, 1)           layer-2 weight column (resident)
    # b2_ref : (1,)              layer-2 bias scalar in SMEM
    # ot_ref : (1, TB)           lane-dense output slab
    #
    # Layer 1 on the MXU, contracting the feature axis of BOTH operands so the
    # batch tile lands on the lane axis of the result: (H1, K) . (TB, K)^T.
    h = lax.dot_general(
        w1t_ref[...], x_ref[...],
        dimension_numbers=(((1,), (1,)), ((), ())),
        preferred_element_type=jnp.float32)                 # (H1, TB)
    h = jnp.maximum(h + b1_ref[...], 0.0)                   # bias bcast, ReLU

    # Layer 2 (10 -> 1): VPU multiply + sublane reduce (MXU would be ~empty).
    y = jnp.sum(h * w2_ref[...], axis=0, keepdims=True)     # (1, TB)

    ot_ref[...] = (y + b2_ref[0]).astype(ot_ref.dtype)


def domain_discriminator(x, w1, b1, w2, b2, *, block_b=8192):
    """Fused Linear->ReLU->Linear forward.

    x : (B, HIDDEN_DIM) float32
    w1: (HIDDEN_DIM, H1)  b1: (H1,)
    w2: (H1, OUT_DIM)     b2: (OUT_DIM,)
    returns (B, OUT_DIM) float32

    block_b: batch tile size (rounded to a multiple of 128).  Default 8192
    keeps the double-buffered input (tb x 128-lane-padded f32) under ~8 MiB,
    safe for the 32 MiB scoped VMEM on v5e/v6e/v7x.  The tile is additionally
    capped so there are >= 2 grid steps when B > 128 (v7x 2-TC megacore).
    """
    B = x.shape[0]

    # Tile size: multiple of 128 output lanes, no bigger than needed for B,
    # no bigger than block_b, and >= 2 grid steps when B permits.
    tb = max(_LANE, (min(block_b, _LANE * pl.cdiv(B, _LANE)) // _LANE) * _LANE)
    if B > _LANE:
        tb = min(tb, _LANE * pl.cdiv(pl.cdiv(B, 2), _LANE))
    grid = (pl.cdiv(B, tb),)

    # Cheap layout plumbing on tiny parameter tensors only (x is untouched).
    w1t = w1.T                          # (H1, HIDDEN_DIM)
    b1c = b1.reshape(H1, 1)             # (H1, 1)
    w2c = w2.reshape(H1, OUT_DIM)       # (H1, 1)
    b2s = b2.reshape(OUT_DIM)           # (1,) -> SMEM scalar

    flops = B * (2 * HIDDEN_DIM * H1 + 4 * H1 + 1)
    bytes_accessed = (B * (HIDDEN_DIM + OUT_DIM) * 4
                      + (HIDDEN_DIM * H1 + H1 + H1 * OUT_DIM + OUT_DIM) * 4)

    yt = pl.pallas_call(
        _disc_kernel,
        out_shape=jax.ShapeDtypeStruct((OUT_DIM, B), jnp.float32),
        grid_spec=pltpu.PrefetchScalarGridSpec(
            num_scalar_prefetch=0,
            grid=grid,
            in_specs=[
                # streamed batch tile, natural layout (double-buffered)
                pl.BlockSpec((tb, HIDDEN_DIM), lambda i: (i, 0)),
                # resident weights / biases (constant index_map -> no re-DMA)
                pl.BlockSpec((H1, HIDDEN_DIM), lambda i: (0, 0)),
                pl.BlockSpec((H1, 1), lambda i: (0, 0)),
                pl.BlockSpec((H1, OUT_DIM), lambda i: (0, 0)),
                # scalar bias in SMEM
                pl.BlockSpec(memory_space=pltpu.MemorySpace.SMEM),
            ],
            out_specs=pl.BlockSpec((OUT_DIM, tb), lambda i: (0, i)),
        ),
        compiler_params=pltpu.CompilerParams(
            dimension_semantics=("parallel",),      # independent batch tiles
            vmem_limit_bytes=32 * 1024 * 1024,
        ),
        cost_estimate=pl.CostEstimate(
            flops=flops, transcendentals=0, bytes_accessed=bytes_accessed),
    )(x, w1t, b1c, w2c, b2s)

    # Back to PyTorch layout (B, 1).
    return yt.T


def _init_params(key):
    """Deterministic PyTorch-style (Kaiming-uniform-ish) init."""
    k1, k2, k3, k4 = jax.random.split(key, 4)
    bound1 = 1.0 / jnp.sqrt(HIDDEN_DIM)
    bound2 = 1.0 / jnp.sqrt(H1)
    w1 = jax.random.uniform(k1, (HIDDEN_DIM, H1), jnp.float32, -bound1, bound1)
    b1 = jax.random.uniform(k2, (H1,), jnp.float32, -bound1, bound1)
    w2 = jax.random.uniform(k3, (H1, OUT_DIM), jnp.float32, -bound2, bound2)
    b2 = jax.random.uniform(k4, (OUT_DIM,), jnp.float32, -bound2, bound2)
    return w1, b1, w2, b2


def _reference(x, w1, b1, w2, b2):
    h = jnp.maximum(x @ w1 + b1, 0.0)
    return h @ w2 + b2


if __name__ == "__main__":
    key = jax.random.PRNGKey(0)
    kx, kp = jax.random.split(key)
    w1, b1, w2, b2 = _init_params(kp)

    # Exercise: single fully-overhanging tile (B=8), partial last tile
    # (B=200), multi-tile grid (B=512 @ block_b=128), and the default tile
    # path (B=512 @ block_b=8192 -> 2 grid steps for megacore).
    cases = [(8, 128), (200, 128), (512, 128), (512, 8192)]
    for batch, blk in cases:
        x = jax.random.normal(jax.random.fold_in(kx, batch),
                              (batch, HIDDEN_DIM), jnp.float32)
        out = domain_discriminator(x, w1, b1, w2, b2, block_b=blk)
        out = jax.block_until_ready(out)

        ref = _reference(x, w1, b1, w2, b2)
        assert out.shape == (batch, OUT_DIM), out.shape
        assert jnp.allclose(out, ref, atol=1e-4, rtol=1e-4), \
            f"mismatch vs reference at B={batch}, block_b={blk}"

    print("KERNEL_OK")
</pallas_src>

<mosaic_0001>
module attributes {stable_mosaic.version = 11 : i64} {
  func.func @_disc_kernel(%arg0: i32, %arg1: memref<128x10xf32, #tpu.memory_space<vmem>>, %arg2: memref<10x10xf32, #tpu.memory_space<vmem>>, %arg3: memref<10x1xf32, #tpu.memory_space<vmem>>, %arg4: memref<10x1xf32, #tpu.memory_space<vmem>>, %arg5: memref<1xf32, #tpu.memory_space<smem>>, %arg6: memref<1x128xf32, #tpu.memory_space<vmem>>) attributes {dimension_semantics = [#tpu.dimension_semantics<parallel>], iteration_bounds = array<i64: 1>, scalar_prefetch = 0 : i64, scratch_operands = 0 : i64, tpu.core_type = #tpu.core_type<tc>, window_params = [{transform_indices = @transform_0, window_bounds = array<i64: 128, 10>}, {pipeline_mode = #tpu.pipeline_mode<synchronous>, transform_indices = @transform_1, window_bounds = array<i64: 10, 10>}, {pipeline_mode = #tpu.pipeline_mode<synchronous>, transform_indices = @transform_2, window_bounds = array<i64: 10, 1>}, {pipeline_mode = #tpu.pipeline_mode<synchronous>, transform_indices = @transform_3, window_bounds = array<i64: 10, 1>}, {transform_indices = @transform_4, window_bounds = array<i64: 1>}, {transform_indices = @transform_5, window_bounds = array<i64: 1, 128>}]} {
    %c0 = arith.constant 0 : index
    %c0_0 = arith.constant 0 : index
    %0 = vector.load %arg2[%c0, %c0_0] : memref<10x10xf32, #tpu.memory_space<vmem>>, vector<10x10xf32>
    %c0_1 = arith.constant 0 : index
    %c0_2 = arith.constant 0 : index
    %1 = vector.load %arg1[%c0_1, %c0_2] : memref<128x10xf32, #tpu.memory_space<vmem>>, vector<128x10xf32>
    %cst = arith.constant dense<0.000000e+00> : vector<10x128xf32>
    %2 = tpu.matmul %0, %1, %cst {dimension_numbers = #tpu.dot_dimension_numbers<[1], [1], [0], [0], [0, 0, 1, 0], [], []>} : vector<10x10xf32>, vector<128x10xf32>, vector<10x128xf32> -> vector<10x128xf32>
    %c0_3 = arith.constant 0 : index
    %c0_4 = arith.constant 0 : index
    %3 = vector.load %arg3[%c0_3, %c0_4] : memref<10x1xf32, #tpu.memory_space<vmem>>, vector<10x1xf32>
    %4 = vector.broadcast %3 : vector<10x1xf32> to vector<10x128xf32>
    %5 = arith.addf %2, %4 : vector<10x128xf32>
    %cst_5 = arith.constant 0.000000e+00 : f32
    %6 = vector.broadcast %cst_5 : f32 to vector<10x128xf32>
    %7 = arith.maximumf %5, %6 : vector<10x128xf32>
    %c0_6 = arith.constant 0 : index
    %c0_7 = arith.constant 0 : index
    %8 = vector.load %arg4[%c0_6, %c0_7] : memref<10x1xf32, #tpu.memory_space<vmem>>, vector<10x1xf32>
    %9 = vector.broadcast %8 : vector<10x1xf32> to vector<10x128xf32>
    %10 = arith.mulf %7, %9 : vector<10x128xf32>
    %cst_8 = arith.constant dense<0.000000e+00> : vector<128xf32>
    %11 = vector.multi_reduction <add>, %10, %cst_8 [0] : vector<10x128xf32> to vector<128xf32>
    %12 = vector.shape_cast %11 : vector<128xf32> to vector<1x128xf32>
    %c0_9 = arith.constant 0 : index
    %13 = memref.load %arg5[%c0_9] : memref<1xf32, #tpu.memory_space<smem>>
    %14 = vector.broadcast %13 : f32 to vector<1x128xf32>
    %15 = arith.addf %12, %14 : vector<1x128xf32>
    %c0_10 = arith.constant 0 : index
    %c0_11 = arith.constant 0 : index
    %16 = vector.load %arg6[%c0_10, %c0_11] : memref<1x128xf32, #tpu.memory_space<vmem>>, vector<1x128xf32>
    tpu.vector_store %arg6[%c0_10, %c0_11], %15 {strides = array<i32>} : memref<1x128xf32, #tpu.memory_space<vmem>>, vector<1x128xf32>,
    return
  }
  func.func @transform_0(%arg0: i32) -> (i32, i32) {
    %c0_i32 = arith.constant 0 : i32
    %c0_i32_0 = arith.constant 0 : i32
    return %arg0, %c0_i32 : i32, i32
  }
  func.func @transform_1(%arg0: i32) -> (i32, i32) {
    %c0_i32 = arith.constant 0 : i32
    %c0_i32_0 = arith.constant 0 : i32
    %c0_i32_1 = arith.constant 0 : i32
    return %c0_i32, %c0_i32_0 : i32, i32
  }
  func.func @transform_2(%arg0: i32) -> (i32, i32) {
    %c0_i32 = arith.constant 0 : i32
    %c0_i32_0 = arith.constant 0 : i32
    %c0_i32_1 = arith.constant 0 : i32
    return %c0_i32, %c0_i32_0 : i32, i32
  }
  func.func @transform_3(%arg0: i32) -> (i32, i32) {
    %c0_i32 = arith.constant 0 : i32
    %c0_i32_0 = arith.constant 0 : i32
    %c0_i32_1 = arith.constant 0 : i32
    return %c0_i32, %c0_i32_0 : i32, i32
  }
  func.func @transform_4(%arg0: i32) -> i32 {
    %c0_i32 = arith.constant 0 : i32
    %c0_i32_0 = arith.constant 0 : i32
    return %c0_i32 : i32
  }
  func.func @transform_5(%arg0: i32) -> (i32, i32) {
    %c0_i32 = arith.constant 0 : i32
    %c0_i32_0 = arith.constant 0 : i32
    return %c0_i32, %arg0 : i32, i32
  }
}

</mosaic_0001>

<bundles_post_ra>
// kernel: tpu_custom_call.1
= control target key start
LH: loop header
LB: loop body
LE: loop exit
PB: predicated region body
PF: predicated region fallthrough
CT: control target
= control target key end

     0   :  { %vm52_vm0 = vcmask 80896   ;;  %v322_v2 = vmov 0   ;;  %s460_s0 = inlined_call_operand.vmem [shape: f32[8,10], index: 0, kind: input, shape index: {}]   ;;  %s461_s1 = inlined_call_operand.vmem [shape: f32[10,10], index: 1, kind: input, shape index: {}]   ;;  %s462_s2 = inlined_call_operand.vmem [shape: f32[10,1], index: 2, kind: input, shape index: {}]   ;;  %s463_s3 = inlined_call_operand.vmem [shape: f32[10,1], index: 3, kind: input, shape index: {}]   ;;  %s464_s4 = inlined_call_operand.<no memory space> [shape: f32[1], index: 4, kind: input, shape index: {}]   ;;  %s465_s5 = inlined_call_operand.hbm [shape: f32[1,8], index: 5, kind: output, shape index: {}]  }
   0x1   :  { %v39_v0 = vld [vmem:[%s460_s0 + $0x78] sm:$0xff]  ;;  %v38_v1 = vld [vmem:[%s460_s0 + $0x70] sm:$0xff]  ;;  %298 = vset.pattern.permute.xlu0 %v322_v2  ;;  %299 = vset.pattern.permute.xlu1 %v322_v2  ;;  %v37_v3 = vld [vmem:[%s460_s0 + $0x68] sm:$0xff] }
   0x2   :  { %261 = vmatprep.subr.msk.mxu0 %vm52_vm0, %v39_v0  ;;  %v22_v4 = vld [vmem:[%s461_s1] sm:$0xff]  ;;  %v41_v5 = vld [vmem:[%s462_s2 + $0x8] sm:$0x3] }
   0x3   :  { %262 = vmatpush3.xpose.msk.msra.mxu0 %vm52_vm0, %v39_v0  ;;  %293 = vmatprep.mubr.msk.f32.mxu0 %vm52_vm0, %v22_v4  ;;  %v185_v6 = vld [vmem:[%s463_s3 + $0x8] sm:$0x3] }
   0x4   :  { %263 = vmatprep.subr.msk.mxu0 %vm52_vm0, %v38_v1  ;;  %49 = vperm.xlu0 %298, %v41_v5  }
   0x7   :  { %264 = vmatpush3.xpose.msk.msra.mxu0 %vm52_vm0, %v38_v1 }
   0x8   :  { %265 = vmatprep.subr.msk.mxu0 %vm52_vm0, %v37_v3 }
   0x9   :  { %11 = vsyncpa [#allocation4], 0  ;;  %v36_v7 = vld [vmem:[%s460_s0 + $0x60] sm:$0xff]  ;;  %193 = vperm.xlu1 %299, %v185_v6   ;;  %v35_v10 = vld [vmem:[%s460_s0 + $0x58] sm:$0xff]  ;;  %vm198_vm1 = vcmask 1041408   ;;  %v208_v42 = vstv %s464_s4  ;;  %s323_s10 = smov [#allocation3]  }
   0xa   :  { %v40_v8 = vld [vmem:[%s462_s2] sm:$0xff]  ;;  %v34_v11 = vld [vmem:[%s460_s0 + $0x50] sm:$0xff]  ;;  %v33_v12 = vld [vmem:[%s460_s0 + $0x48] sm:$0xff]  ;;  %s217_s11 = sshll.u32 %s323_s10, 4  ;;  %s218_s11 = int_to_ptr.vmem [resolvable:$true] %s217_s11 }
   0xb   :  { %v184_v9 = vld [vmem:[%s463_s3] sm:$0xff]  ;;  %266 = vmatpush3.xpose.msk.msra.mxu0 %vm52_vm0, %v37_v3  ;;  %44 = vperm.xlu0 %298, %v40_v8   ;;  %v31_v14 = vld [vmem:[%s460_s0 + $0x38] sm:$0xff]  ;;  %v30_v15 = vld [vmem:[%s460_s0 + $0x30] sm:$0xff]  ;;  %s300_s12 = scalar_lea.vmem %s218_s11, 16  ;;  %s304_s13 = scalar_lea.vmem %s218_s11, 32 }
   0xc   :  { %267 = vmatprep.subr.msk.mxu0 %vm52_vm0, %v36_v7  ;;  %v32_v13 = vld [vmem:[%s460_s0 + $0x40] sm:$0xff]  ;;  %v29_v16 = vld [vmem:[%s460_s0 + $0x28] sm:$0xff]  ;;  %v27_v18 = vld [vmem:[%s460_s0 + $0x18] sm:$0xff]  ;;  %p301_p0 = scmp.ne.s32.totalorder %s218_s11, %s300_s12  ;;  %p305_p1 = scmp.lt.s32.totalorder %s218_s11, %s218_s11 }
   0xd   :  { %188 = vperm.xlu1 %299, %v184_v9   ;;  %v28_v17 = vld [vmem:[%s460_s0 + $0x20] sm:$0xff]  ;;  %v26_v19 = vld [vmem:[%s460_s0 + $0x10] sm:$0xff]  ;;  %v25_v20 = vld [vmem:[%s460_s0 + $0x8] sm:$0xff]  ;;  %p306_p2 = scmp.lt.s32.totalorder %s304_s13, %s300_s12 }
   0xe   :  { %v24_v21 = vld [vmem:[%s460_s0] sm:$0xff]  ;;  %v23_v22 = vld [vmem:[%s461_s1 + $0x8] sm:$0x3] }
   0xf   :  { %268 = vmatpush3.xpose.msk.msra.mxu0 %vm52_vm0, %v36_v7  ;;  %p307_p3 = por %p306_p2, %p305_p1 }
  0x10   :  { %269 = vmatprep.subr.msk.mxu0 %vm52_vm0, %v35_v10 }
  0x11   :  { %p308_p4 = pnand %p307_p3, %p301_p0 }
  0x13   :  { %270 = vmatpush3.xpose.msk.msra.mxu0 %vm52_vm0, %v35_v10 }
  0x14   :  { %271 = vmatprep.subr.msk.mxu0 %vm52_vm0, %v34_v11 }
  0x17   :  { %272 = vmatpush3.xpose.msk.msra.mxu0 %vm52_vm0, %v34_v11 }
  0x18   :  { %273 = vmatprep.subr.msk.mxu0 %vm52_vm0, %v33_v12 }
  0x1b   :  { %274 = vmatpush3.xpose.msk.msra.mxu0 %vm52_vm0, %v33_v12 }
  0x1c   :  { %275 = vmatprep.subr.msk.mxu0 %vm52_vm0, %v32_v13 }
  0x1f   :  { %276 = vmatpush3.xpose.msk.msra.mxu0 %vm52_vm0, %v32_v13 }
  0x20   :  { %277 = vmatprep.subr.msk.mxu0 %vm52_vm0, %v31_v14 }
  0x23   :  { %278 = vmatpush3.xpose.msk.msra.mxu0 %vm52_vm0, %v31_v14 }
  0x24   :  { %279 = vmatprep.subr.msk.mxu0 %vm52_vm0, %v30_v15 }
  0x27   :  { %280 = vmatpush3.xpose.msk.msra.mxu0 %vm52_vm0, %v30_v15 }
  0x28   :  { %281 = vmatprep.subr.msk.mxu0 %vm52_vm0, %v29_v16 }
  0x2b   :  { %282 = vmatpush3.xpose.msk.msra.mxu0 %vm52_vm0, %v29_v16 }
  0x2c   :  { %283 = vmatprep.subr.msk.mxu0 %vm52_vm0, %v28_v17 }
  0x2f   :  { %284 = vmatpush3.xpose.msk.msra.mxu0 %vm52_vm0, %v28_v17 }
  0x30   :  { %285 = vmatprep.subr.msk.mxu0 %vm52_vm0, %v27_v18 }
  0x33   :  { %286 = vmatpush3.xpose.msk.msra.mxu0 %vm52_vm0, %v27_v18 }
  0x34   :  { %287 = vmatprep.subr.msk.mxu0 %vm52_vm0, %v26_v19 }
  0x37   :  { %288 = vmatpush3.xpose.msk.msra.mxu0 %vm52_vm0, %v26_v19 }
  0x38   :  { %289 = vmatprep.subr.msk.mxu0 %vm52_vm0, %v25_v20 }
  0x3b   :  { %290 = vmatpush3.xpose.msk.msra.mxu0 %vm52_vm0, %v25_v20 }
  0x3c   :  { %291 = vmatprep.subr.msk.mxu0 %vm52_vm0, %v24_v21 }
  0x3f   :  { %292 = vmatpush3.xpose.msk.msra.mxu0 %vm52_vm0, %v24_v21 }
  0x42   :  { %294 = vmatmul.mubr.msk.f32.vlgmr.msra.gmra.mxu0 %vm52_vm0, %v23_v22 }
  0x7f   :  { %v50_v23 = vpop.permute.xlu0 %49 }
  0x84   :  { %v194_v24 = vpop.permute.xlu1 %193 }
  0x86   :  { %v45_v27 = vpop.permute.xlu0 %44 }
  0x88   :  { %v189_v33 = vpop.permute.xlu1 %188 }
 0x102   :  { %v295_v25 = vpop.f32.mrf.mxu0 }
 0x103   :  { %v179_v26 = vadd.f32 %v295_v25, %v50_v23 }
 0x104   :  { %v173_v28 = vpop.f32.mrf.mxu0 }
 0x105   :  { %v183_v29 = vmax.f32 %v179_v26, 0.0  ;;  %v174_v30 = vadd.f32 %v173_v28, %v45_v27 }
 0x107   :  { %v197_v31 = vmul.f32 %v194_v24, %v183_v29  ;;  %v182_v32 = vmax.f32 %v174_v30, 0.0 }
 0x109   :  { %v199_v34 = vsel %vm198_vm1, %v197_v31, 0.0  ;;  %v196_v35 = vmul.f32 %v189_v33, %v182_v32 }
 0x10b   :  { %v200_v36 = vadd.f32 %v199_v34, %v196_v35 }
 0x10d   :  { %v201_v37 = vrot.slane %v200_v36, 4 }
 0x10f   :  { %v202_v38 = vadd.f32 %v201_v37, %v200_v36 }
 0x111   :  { %v203_v39 = vrot.slane %v202_v38, 2 }
 0x113   :  { %v204_v40 = vadd.f32 %v203_v39, %v202_v38 }
 0x115   :  { %v205_v41 = vrot.slane %v204_v40, 1 }
 0x117   :  { %v206_v43 = vadd.f32 %v205_v41, %v204_v40 }
 0x119   :  { %v209_v44 = vadd.f32 %v208_v42, %v206_v43 }
 0x11b   :  { %210 = vst [vmem:[#allocation3] sm:$0x1] %v209_v44 }
 0x11c   :  { %311 = shalt.err (!%p308_p4)
}
 0x11d   :  { %220 = dma.vmem_to_hbm [thread:$0]  %s218_s11, 16, %s465_s5, [#allocation4]  }
 0x11e   :  { %320 = dma.done.wait [#allocation4], 16  }
 0x11f   :  { %321 = vsyncadd [#allocation4], 4294967280 }
 0x120   :  { %224 = vsyncpa [#allocation4], 1 }

</bundles_post_ra>
